<compile_context>
chip_gen: v5e
topology: v5e:2x2
jax: 0.10.0
libtpu: 0.0.40
codegen_flags: <defaults>
</compile_context>

<pallas_src>
import functools

import jax
import jax.numpy as jnp
from jax.experimental import pallas as pl
from jax.experimental.pallas import tpu as pltpu


def _sylvester_kernel(zk_ref, qt_ref, r1l_ref, r2l_ref, bd_ref, z_ref, ld_ref,
                      *, sum_ldj):
    """One batch tile of the Sylvester flow.

    Layouts:
      zk_ref : (TB, Z)     batch on sublanes, z on lanes
      qt_ref : (TB, M, Z)  Q^T per batch row (lane-dense in Z)
      r1l_ref: (M, M, TB)  r1l[m, n, b] = R1[b, m, n]   (batch on lanes)
      r2l_ref: (M, M, TB)  r2l[n, m, b] = R2[b, n, m]   (batch on lanes)
      bd_ref : (2M, TB)    rows [0:M] = b^T, rows [M:2M] = (diagR1*diagR2)^T
      z_ref  : (TB, Z)
      ld_ref : (1, TB) if sum_ldj else (M, TB)          (lane-dense stores)
    """
    M = r1l_ref.shape[0]

    zk = zk_ref[...]                                     # (TB, Z)
    qt = qt_ref[...]                                     # (TB, M, Z)
    r1l = r1l_ref[...]                                   # (M, M, TB)
    r2l = r2l_ref[...]                                   # (M, M, TB)
    bd = bd_ref[...]                                     # (2M, TB)
    b_t = bd[:M]                                         # (M, TB)
    d_t = bd[M:]                                         # (M, TB)

    # Stage A (Z-space): zq[b, m] = sum_z zk[b, z] * Q[b, z, m]
    zq = jnp.sum(qt * zk[:, None, :], axis=-1)           # (TB, M)
    zq_t = zq.T                                          # (M, TB) batch-on-lanes

    # Stage B (M-space, batch on lanes; contractions are sublane reduces):
    # r2qzb[b, n] = sum_m zq[b, m] * R2[b, n, m] + b[b, n]
    r2qzb_t = jnp.sum(r2l * zq_t[None, :, :], axis=1) + b_t     # (M, TB)
    hz_t = jnp.tanh(r2qzb_t)                                    # (M, TB)
    # hr1[b, m] = sum_n R1[b, m, n] * h[b, n]
    hr1_t = jnp.sum(r1l * hz_t[None, :, :], axis=1)             # (M, TB)

    # Stage C (Z-space): z'[b, z] = zk[b, z] + sum_m Q[b, z, m] * hr1[b, m]
    hr1 = hr1_t.T                                        # (TB, M)
    z_new = jnp.sum(qt * hr1[:, :, None], axis=1) + zk   # (TB, Z)
    z_ref[...] = z_new.astype(z_ref.dtype)

    # log |diag J| = log |tanh'(r2qzb) * diag(R1)*diag(R2) + 1|
    der = 1.0 - hz_t * hz_t
    log_diag_t = jnp.log(jnp.abs(der * d_t + 1.0))       # (M, TB)
    if sum_ldj:
        ld_ref[...] = jnp.sum(log_diag_t, axis=0, keepdims=True)   # (1, TB)
    else:
        ld_ref[...] = log_diag_t                                    # (M, TB)


def sylvester_forward(zk, r1, r2, q_ortho, b, sum_ldj=True, *,
                      q_transposed=False, tb_max=512):
    """Sylvester flow forward.

    zk: (B, Z); r1, r2: (B, M, M); b: (B, 1, M).
    q_ortho: (B, Z, M) (PyTorch layout, default) or (B, M, Z) if
      q_transposed=True (preferred: produce Q in this layout upstream so no
      HBM transpose of the dominant array is needed here).
    tb_max: max batch-tile size; must be a multiple of 128 (sweep 256..1024,
      ~256 is enough on v5e, larger helps v6e/v7x).
    """
    assert tb_max % 128 == 0, "tb_max must be a multiple of 128"
    B, Z = zk.shape
    M = r1.shape[-1]

    # Q lane-dense in Z. If q_transposed, this is a no-op (no HBM round trip).
    qt = q_ortho if q_transposed else jnp.swapaxes(q_ortho, 1, 2)   # (B, M, Z)

    # Small params re-laid out batch-on-lanes (tiny arrays; cheap wrapper work).
    r1l = jnp.transpose(r1, (1, 2, 0))                   # (M, M, B)
    r2l = jnp.transpose(r2, (1, 2, 0))                   # (M, M, B)
    b_t = jnp.transpose(b[:, 0, :], (1, 0))              # (M, B)
    dprod_t = (jnp.diagonal(r1, axis1=1, axis2=2) *
               jnp.diagonal(r2, axis1=1, axis2=2)).T     # (M, B)
    bd = jnp.concatenate([b_t, dprod_t], axis=0)         # (2M, B)

    # Batch tile: whole batch in one tile when small, else tb_max (ragged last
    # tile allowed -- block lane dims stay multiples of 128).
    TB = B if B <= tb_max else tb_max
    n_tiles = pl.cdiv(B, TB)

    ld_shape = (1, B) if sum_ldj else (M, B)
    ld_block = (1, TB) if sum_ldj else (M, TB)

    cost = pl.CostEstimate(
        flops=int(B * (4 * M * Z + 4 * M * M + 10 * M)),
        transcendentals=int(B * 2 * M),
        bytes_accessed=int(4 * B * (2 * Z + M * Z + 2 * M * M + 3 * M + 1)),
    )

    kernel = functools.partial(_sylvester_kernel, sum_ldj=sum_ldj)

    z_out, ld = pl.pallas_call(
        kernel,
        out_shape=(
            jax.ShapeDtypeStruct((B, Z), zk.dtype),
            jax.ShapeDtypeStruct(ld_shape, jnp.float32),
        ),
        grid_spec=pltpu.PrefetchScalarGridSpec(
            num_scalar_prefetch=0,
            grid=(n_tiles,),
            in_specs=[
                pl.BlockSpec((TB, Z), lambda i: (i, 0)),        # zk
                pl.BlockSpec((TB, M, Z), lambda i: (i, 0, 0)),  # qt (dominant)
                pl.BlockSpec((M, M, TB), lambda i: (0, 0, i)),  # r1l
                pl.BlockSpec((M, M, TB), lambda i: (0, 0, i)),  # r2l
                pl.BlockSpec((2 * M, TB), lambda i: (0, i)),    # [b^T; dprod^T]
            ],
            out_specs=(
                pl.BlockSpec((TB, Z), lambda i: (i, 0)),
                pl.BlockSpec(ld_block, lambda i: (0, i)),
            ),
        ),
        compiler_params=pltpu.CompilerParams(
            dimension_semantics=("parallel",),
        ),
        cost_estimate=cost,
    )(zk, qt, r1l, r2l, bd)

    if sum_ldj:
        return z_out, ld[0]
    return z_out, ld.T                                   # (B, M)


def sylvester_reference(zk, r1, r2, q_ortho, b):
    """Pure-JAX reference matching the PyTorch semantics."""
    zk_ = zk[:, None, :]                                 # (B, 1, Z)
    diag_r1 = jnp.diagonal(r1, axis1=1, axis2=2)         # (B, M)
    diag_r2 = jnp.diagonal(r2, axis1=1, axis2=2)         # (B, M)
    qr2 = jnp.einsum("bzm,bnm->bzn", q_ortho, r2)        # Q @ R2^T
    qr1 = jnp.einsum("bzm,bmn->bzn", q_ortho, r1)        # Q @ R1
    r2qzb = jnp.einsum("boz,bzm->bom", zk_, qr2) + b     # (B, 1, M)
    z = jnp.einsum("bom,bzm->boz", jnp.tanh(r2qzb), qr1) + zk_
    z = z[:, 0, :]
    diag_j = (1.0 - jnp.tanh(r2qzb[:, 0, :]) ** 2) * diag_r1 * diag_r2 + 1.0
    log_diag_j = jnp.log(jnp.abs(diag_j))
    return z, log_diag_j.sum(-1), log_diag_j


def _make_inputs(key, B, Z, M, orthonormal_q=True):
    k1, k2, k3, k4, k5 = jax.random.split(key, 5)
    zk = jax.random.normal(k1, (B, Z), dtype=jnp.float32)
    r1 = 0.1 * jax.random.normal(k2, (B, M, M), dtype=jnp.float32)
    r2 = 0.1 * jax.random.normal(k3, (B, M, M), dtype=jnp.float32)
    q_raw = jax.random.normal(k4, (B, Z, M), dtype=jnp.float32)
    if orthonormal_q:
        q_ortho, _ = jnp.linalg.qr(q_raw)
    else:
        q_ortho = 0.1 * q_raw   # orthonormality not needed for numeric check
    b = 0.1 * jax.random.normal(k5, (B, 1, M), dtype=jnp.float32)
    return zk, r1, r2, q_ortho, b


if __name__ == "__main__":
    Z, M = 128, 8  # z_size, num_ortho_vecs

    # --- Test 1: small batch, single tile; preferred pre-transposed-Q path ---
    B = 4
    key = jax.random.PRNGKey(0)
    zk, r1, r2, q_ortho, b = _make_inputs(key, B, Z, M, orthonormal_q=True)
    q_t = jnp.swapaxes(q_ortho, 1, 2)   # (B, M, Z): "produced upstream" layout

    z_out, ldj = sylvester_forward(zk, r1, r2, q_t, b, sum_ldj=True,
                                   q_transposed=True)
    # Default PyTorch-layout path + per-dimension log-det output.
    z_out2, log_diag = sylvester_forward(zk, r1, r2, q_ortho, b, sum_ldj=False)
    jax.block_until_ready((z_out, ldj, z_out2, log_diag))

    z_ref, ldj_ref, log_diag_ref = sylvester_reference(zk, r1, r2, q_ortho, b)
    assert jnp.allclose(z_out, z_ref, rtol=1e-4, atol=1e-4), "z mismatch"
    assert jnp.allclose(ldj, ldj_ref, rtol=1e-4, atol=1e-4), "log_det_j mismatch"
    assert jnp.allclose(z_out2, z_ref, rtol=1e-4, atol=1e-4), "z (sum_ldj=False) mismatch"
    assert jnp.allclose(log_diag, log_diag_ref, rtol=1e-4, atol=1e-4), "per-dim ldj mismatch"

    # --- Test 2: multi-tile grid with a ragged last tile (no padding path) ---
    B2 = 200
    zk2, r12, r22, q2, b2 = _make_inputs(jax.random.PRNGKey(1), B2, Z, M,
                                         orthonormal_q=False)
    z_out3, ldj3 = sylvester_forward(zk2, r12, r22, q2, b2, sum_ldj=True,
                                     tb_max=128)   # 2 tiles: 128 + ragged 72
    jax.block_until_ready((z_out3, ldj3))
    z_ref3, ldj_ref3, _ = sylvester_reference(zk2, r12, r22, q2, b2)
    assert jnp.allclose(z_out3, z_ref3, rtol=1e-4, atol=1e-4), "z mismatch (ragged)"
    assert jnp.allclose(ldj3, ldj_ref3, rtol=1e-4, atol=1e-4), "ldj mismatch (ragged)"

    print("KERNEL_OK")
</pallas_src>

<mosaic_0001>
module attributes {stable_mosaic.version = 11 : i64} {
  func.func @_sylvester_kernel(%arg0: i32, %arg1: memref<4x128xf32, #tpu.memory_space<vmem>>, %arg2: memref<4x8x128xf32, #tpu.memory_space<vmem>>, %arg3: memref<8x8x4xf32, #tpu.memory_space<vmem>>, %arg4: memref<8x8x4xf32, #tpu.memory_space<vmem>>, %arg5: memref<16x4xf32, #tpu.memory_space<vmem>>, %arg6: memref<4x128xf32, #tpu.memory_space<vmem>>, %arg7: memref<1x4xf32, #tpu.memory_space<vmem>>) attributes {dimension_semantics = [#tpu.dimension_semantics<parallel>], iteration_bounds = array<i64: 1>, scalar_prefetch = 0 : i64, scratch_operands = 0 : i64, tpu.core_type = #tpu.core_type<tc>, window_params = [{transform_indices = @transform_0, window_bounds = array<i64: 4, 128>}, {transform_indices = @transform_1, window_bounds = array<i64: 4, 8, 128>}, {transform_indices = @transform_2, window_bounds = array<i64: 8, 8, 4>}, {transform_indices = @transform_3, window_bounds = array<i64: 8, 8, 4>}, {transform_indices = @transform_4, window_bounds = array<i64: 16, 4>}, {transform_indices = @transform_5, window_bounds = array<i64: 4, 128>}, {transform_indices = @transform_6, window_bounds = array<i64: 1, 4>}]} {
    %c0 = arith.constant 0 : index
    %c0_0 = arith.constant 0 : index
    %0 = vector.load %arg1[%c0, %c0_0] : memref<4x128xf32, #tpu.memory_space<vmem>>, vector<4x128xf32>
    %c0_1 = arith.constant 0 : index
    %c0_2 = arith.constant 0 : index
    %c0_3 = arith.constant 0 : index
    %1 = vector.load %arg2[%c0_1, %c0_2, %c0_3] : memref<4x8x128xf32, #tpu.memory_space<vmem>>, vector<4x8x128xf32>
    %c0_4 = arith.constant 0 : index
    %c0_5 = arith.constant 0 : index
    %c0_6 = arith.constant 0 : index
    %2 = vector.load %arg3[%c0_4, %c0_5, %c0_6] : memref<8x8x4xf32, #tpu.memory_space<vmem>>, vector<8x8x4xf32>
    %c0_7 = arith.constant 0 : index
    %c0_8 = arith.constant 0 : index
    %c0_9 = arith.constant 0 : index
    %3 = vector.load %arg4[%c0_7, %c0_8, %c0_9] : memref<8x8x4xf32, #tpu.memory_space<vmem>>, vector<8x8x4xf32>
    %c0_10 = arith.constant 0 : index
    %c0_11 = arith.constant 0 : index
    %4 = vector.load %arg5[%c0_10, %c0_11] : memref<16x4xf32, #tpu.memory_space<vmem>>, vector<16x4xf32>
    %5 = vector.extract_strided_slice %4 {offsets = [0, 0], sizes = [8, 4], strides = [1, 1]} : vector<16x4xf32> to vector<8x4xf32>
    %6 = vector.extract_strided_slice %4 {offsets = [8, 0], sizes = [8, 4], strides = [1, 1]} : vector<16x4xf32> to vector<8x4xf32>
    %7 = vector.shape_cast %0 : vector<4x128xf32> to vector<4x1x128xf32>
    %8 = vector.broadcast %7 : vector<4x1x128xf32> to vector<4x8x128xf32>
    %9 = arith.mulf %1, %8 : vector<4x8x128xf32>
    %cst = arith.constant dense<0.000000e+00> : vector<4x8xf32>
    %10 = vector.multi_reduction <add>, %9, %cst [2] : vector<4x8x128xf32> to vector<4x8xf32>
    %11 = tpu.transpose %10, [1, 0] : vector<4x8xf32> -> vector<8x4xf32>
    %12 = vector.shape_cast %11 : vector<8x4xf32> to vector<1x8x4xf32>
    %13 = vector.broadcast %12 : vector<1x8x4xf32> to vector<8x8x4xf32>
    %14 = arith.mulf %3, %13 : vector<8x8x4xf32>
    %cst_12 = arith.constant dense<0.000000e+00> : vector<8x4xf32>
    %15 = vector.multi_reduction <add>, %14, %cst_12 [1] : vector<8x8x4xf32> to vector<8x4xf32>
    %16 = arith.addf %15, %5 : vector<8x4xf32>
    %17 = math.tanh %16 : vector<8x4xf32>
    %18 = vector.shape_cast %17 : vector<8x4xf32> to vector<1x8x4xf32>
    %19 = vector.broadcast %18 : vector<1x8x4xf32> to vector<8x8x4xf32>
    %20 = arith.mulf %2, %19 : vector<8x8x4xf32>
    %cst_13 = arith.constant dense<0.000000e+00> : vector<8x4xf32>
    %21 = vector.multi_reduction <add>, %20, %cst_13 [1] : vector<8x8x4xf32> to vector<8x4xf32>
    %22 = tpu.transpose %21, [1, 0] : vector<8x4xf32> -> vector<4x8xf32>
    %23 = vector.shape_cast %22 : vector<4x8xf32> to vector<4x8x1xf32>
    %24 = vector.broadcast %23 : vector<4x8x1xf32> to vector<4x8x128xf32>
    %25 = arith.mulf %1, %24 : vector<4x8x128xf32>
    %cst_14 = arith.constant dense<0.000000e+00> : vector<4x128xf32>
    %26 = vector.multi_reduction <add>, %25, %cst_14 [1] : vector<4x8x128xf32> to vector<4x128xf32>
    %27 = arith.addf %26, %0 : vector<4x128xf32>
    %c0_15 = arith.constant 0 : index
    %c0_16 = arith.constant 0 : index
    %28 = vector.load %arg6[%c0_15, %c0_16] : memref<4x128xf32, #tpu.memory_space<vmem>>, vector<4x128xf32>
    tpu.vector_store %arg6[%c0_15, %c0_16], %27 {strides = array<i32>} : memref<4x128xf32, #tpu.memory_space<vmem>>, vector<4x128xf32>,
    %29 = arith.mulf %17, %17 : vector<8x4xf32>
    %cst_17 = arith.constant 1.000000e+00 : f32
    %30 = vector.broadcast %cst_17 : f32 to vector<8x4xf32>
    %31 = arith.subf %30, %29 : vector<8x4xf32>
    %32 = arith.mulf %31, %6 : vector<8x4xf32>
    %cst_18 = arith.constant 1.000000e+00 : f32
    %33 = vector.broadcast %cst_18 : f32 to vector<8x4xf32>
    %34 = arith.addf %32, %33 : vector<8x4xf32>
    %35 = math.absf %34 : vector<8x4xf32>
    %36 = math.log %35 : vector<8x4xf32>
    %cst_19 = arith.constant dense<0.000000e+00> : vector<4xf32>
    %37 = vector.multi_reduction <add>, %36, %cst_19 [0] : vector<8x4xf32> to vector<4xf32>
    %38 = vector.shape_cast %37 : vector<4xf32> to vector<1x4xf32>
    %c0_20 = arith.constant 0 : index
    %c0_21 = arith.constant 0 : index
    %39 = vector.load %arg7[%c0_20, %c0_21] : memref<1x4xf32, #tpu.memory_space<vmem>>, vector<1x4xf32>
    tpu.vector_store %arg7[%c0_20, %c0_21], %38 {strides = array<i32>} : memref<1x4xf32, #tpu.memory_space<vmem>>, vector<1x4xf32>,
    return
  }
  func.func @transform_0(%arg0: i32) -> (i32, i32) {
    %c0_i32 = arith.constant 0 : i32
    %c0_i32_0 = arith.constant 0 : i32
    return %arg0, %c0_i32 : i32, i32
  }
  func.func @transform_1(%arg0: i32) -> (i32, i32, i32) {
    %c0_i32 = arith.constant 0 : i32
    %c0_i32_0 = arith.constant 0 : i32
    %c0_i32_1 = arith.constant 0 : i32
    return %arg0, %c0_i32, %c0_i32_0 : i32, i32, i32
  }
  func.func @transform_2(%arg0: i32) -> (i32, i32, i32) {
    %c0_i32 = arith.constant 0 : i32
    %c0_i32_0 = arith.constant 0 : i32
    %c0_i32_1 = arith.constant 0 : i32
    return %c0_i32, %c0_i32_0, %arg0 : i32, i32, i32
  }
  func.func @transform_3(%arg0: i32) -> (i32, i32, i32) {
    %c0_i32 = arith.constant 0 : i32
    %c0_i32_0 = arith.constant 0 : i32
    %c0_i32_1 = arith.constant 0 : i32
    return %c0_i32, %c0_i32_0, %arg0 : i32, i32, i32
  }
  func.func @transform_4(%arg0: i32) -> (i32, i32) {
    %c0_i32 = arith.constant 0 : i32
    %c0_i32_0 = arith.constant 0 : i32
    return %c0_i32, %arg0 : i32, i32
  }
  func.func @transform_5(%arg0: i32) -> (i32, i32) {
    %c0_i32 = arith.constant 0 : i32
    %c0_i32_0 = arith.constant 0 : i32
    return %arg0, %c0_i32 : i32, i32
  }
  func.func @transform_6(%arg0: i32) -> (i32, i32) {
    %c0_i32 = arith.constant 0 : i32
    %c0_i32_0 = arith.constant 0 : i32
    return %c0_i32, %arg0 : i32, i32
  }
}

</mosaic_0001>

<bundles_post_ra>
// kernel: tpu_custom_call.1
= control target key start
LH: loop header
LB: loop body
LE: loop exit
PB: predicated region body
PF: predicated region fallthrough
CT: control target
= control target key end

     0   :  { %12 = vsyncpa [#allocation3], 0  ;;  %s929_s0 = inlined_call_operand.vmem [shape: f32[4,128], index: 0, kind: input, shape index: {}]   ;;  %s930_s1 = inlined_call_operand.vmem [shape: f32[4,8,128], index: 1, kind: input, shape index: {}]   ;;  %s931_s2 = inlined_call_operand.vmem [shape: f32[8,8,4], index: 2, kind: input, shape index: {}]   ;;  %s932_s3 = inlined_call_operand.vmem [shape: f32[8,8,4], index: 3, kind: input, shape index: {}]   ;;  %s933_s4 = inlined_call_operand.vmem [shape: f32[16,4], index: 4, kind: input, shape index: {}]   ;;  %s934_s5 = inlined_call_operand.hbm [shape: f32[4,128], index: 5, kind: output, shape index: {0}]   ;;  %s935_s6 = inlined_call_operand.hbm [shape: f32[1,4], index: 6, kind: output, shape index: {1}]  }
   0x1   :  { %v698_v0 = vld [vmem:[%s929_s0] sm:$0xf]  ;;  %v711_v5 = vld [vmem:[%s930_s1 + $0x10] sm:$0xff] }
   0x2   :  { %v703_v1 = vld [vmem:[%s930_s1] sm:$0xff]  ;;  %v51_v2 = vperm.slane %v698_v0, 0  ;;  %v49_v3 = vrot.slane %v698_v0, 2  ;;  %v48_v4 = vrot.slane %v698_v0, 1 }
   0x3   :  { %13 = vsyncpa [#allocation5], 0  ;;  %v50_v8 = vrot.slane %v698_v0, 3  ;;  %v723_v11 = vld [vmem:[%s930_s1 + $0x8] sm:$0xff]  ;;  %v730_v13 = vld [vmem:[%s930_s1 + $0x18] sm:$0xff]  ;;  %v75_v17 = vlaneseq  ;;  %vm81_vm0 = vcmask 1041409  }
   0x4   :  { %v59_v6 = vmul.f32 %v51_v2, %v703_v1  ;;  %v53_v7 = vperm.slane %v49_v3, 0  ;;  %v52_v10 = vperm.slane %v48_v4, 0  ;;  %vm83_vm1 = vcmask 1042434   ;;  %v741_v29 = vld [vmem:[%s933_s4] sm:$0xff]  ;;  %v38_v31 = vld [vmem:[%s932_s3 + $0x8] sm:$0xff]  ;;  %v39_v32 = vld [vmem:[%s932_s3 + $0x10] sm:$0xff] }
   0x5   :  { %v54_v12 = vperm.slane %v50_v8, 0  ;;  %v76_v19 = vand.u32 127, %v75_v17  ;;  %vm85_vm2 = vcmask 1043459   ;;  %v37_v30 = vld [vmem:[%s932_s3] sm:$0xff]  ;;  %v40_v33 = vld [vmem:[%s932_s3 + $0x18] sm:$0xff]  ;;  %vm128_vm3 = vcmask 31744  }
   0x6   :  { %63 = vadd.xlane.f32.xlu0 %v59_v6  ;;  %v61_v9 = vmul.f32 %v53_v7, %v711_v5  ;;  %v60_v14 = vmul.f32 %v52_v10, %v723_v11  ;;  %v41_v34 = vld [vmem:[%s932_s3 + $0x20] sm:$0xff]  ;;  %v42_v35 = vld [vmem:[%s932_s3 + $0x28] sm:$0xff]  ;;  %v43_v36 = vld [vmem:[%s932_s3 + $0x30] sm:$0xff]  ;;  %v186_v38 = vrot.slane %v741_v29, 1  ;;  %v187_v39 = vrot.slane %v741_v29, 2  ;;  %s554_s16 = sshll.u32 %s935_s6, 4  ;;  %s555_s16 = int_to_ptr.hbm [resolvable:$true] %s554_s16 }
   0x7   :  { %v62_v15 = vmul.f32 %v54_v12, %v730_v13  ;;  %v44_v37 = vld [vmem:[%s932_s3 + $0x38] sm:$0xff]  ;;  %v188_v40 = vrot.slane %v741_v29, 3  ;;  %v189_v42 = vrot.slane %v741_v29, 4  ;;  %v190_v43 = vrot.slane %v741_v29, 5  ;;  %s659_s6 = smov [#allocation2]   ;;  %s543_s20 = sshll.u32 %s934_s5, 4  ;;  %s544_s20 = int_to_ptr.hbm [resolvable:$true] %s543_s20 }
   0x8   :  { %67 = vadd.xlane.f32.xlu1 %v61_v9  ;;  %v191_v44 = vrot.slane %v741_v29, 6  ;;  %v192_v45 = vrot.slane %v741_v29, 7  ;;  %vm232_vm4 = vcmask 1044484   ;;  %vm235_vm5 = vcmask 1045509   ;;  %s541_s17 = sshll.u32 %s659_s6, 4  ;;  %s542_s17 = int_to_ptr.vmem [resolvable:$true] %s541_s17 }
   0x9   :  { %vm238_vm6 = vcmask 1046534   ;;  %vm241_vm7 = vcmask 1047559   ;;  %vm534_vm8 = vcmask 24576  }
   0xe   :  { %65 = vadd.xlane.f32.xlu0 %v60_v14 }
  0x10   :  { %69 = vadd.xlane.f32.xlu1 %v62_v15 }
  0x79   :  { %v64_v16 = vpop.xlane.xlu0 %63 }
  0x7a   :  { %v77_v21 = vperm.slane %v64_v16, %v76_v19 }
  0x7b   :  { %v68_v18 = vpop.xlane.xlu1 %67 }
  0x7c   :  { %v79_v23 = vperm.slane %v68_v18, %v76_v19 }
  0x81   :  { %v66_v20 = vpop.xlane.xlu0 %65 }
  0x82   :  { %v78_v22 = vperm.slane %v66_v20, %v76_v19 }
  0x83   :  { %v70_v24 = vpop.xlane.xlu1 %69 }
  0x84   :  { %v80_v25 = vperm.slane %v70_v24, %v76_v19  ;;  %v82_v26 = vsel %vm81_vm0, %v78_v22, %v77_v21 }
  0x85   :  { %v84_v27 = vsel %vm83_vm1, %v79_v23, %v82_v26 }
  0x86   :  { %v86_v28 = vsel %vm85_vm2, %v80_v25, %v84_v27 }
  0x87   :  { %88 = vxpose.xlu2.b32.start.end [1/1] (short) (narrow) %v86_v28, 8 }
 0x120   :  { %v104_v41 = vpop.trf.xlu2 }
 0x121   :  { %v120_v46 = vmul.f32 %v104_v41, %v37_v30  ;;  %v121_v47 = vmul.f32 %v104_v41, %v38_v31  ;;  %v122_v48 = vmul.f32 %v104_v41, %v39_v32  ;;  %v123_v49 = vmul.f32 %v104_v41, %v40_v33 }
 0x122   :  { %v124_v50 = vmul.f32 %v104_v41, %v41_v34  ;;  %v125_v51 = vmul.f32 %v104_v41, %v42_v35  ;;  %v126_v52 = vmul.f32 %v104_v41, %v43_v36  ;;  %v127_v53 = vmul.f32 %v104_v41, %v44_v37 }
 0x123   :  { %v129_v54 = vsel %vm128_vm3, %v120_v46, 0.0  ;;  %v136_v55 = vsel %vm128_vm3, %v121_v47, 0.0  ;;  %v143_v56 = vsel %vm128_vm3, %v122_v48, 0.0  ;;  %v150_v57 = vsel %vm128_vm3, %v123_v49, 0.0 }
 0x124   :  { %v130_v58 = vrot.slane %v129_v54, 4  ;;  %v137_v59 = vrot.slane %v136_v55, 4  ;;  %v144_v60 = vrot.slane %v143_v56, 4  ;;  %v151_v61 = vrot.slane %v150_v57, 4 }
 0x125   :  { %v157_v62 = vsel %vm128_vm3, %v124_v50, 0.0  ;;  %v164_v63 = vsel %vm128_vm3, %v125_v51, 0.0  ;;  %v171_v2 = vsel %vm128_vm3, %v126_v52, 0.0  ;;  %v178_v6 = vsel %vm128_vm3, %v127_v53, 0.0 }
 0x126   :  { %v131_v7 = vadd.f32 %v130_v58, %v129_v54  ;;  %v138_v9 = vadd.f32 %v137_v59, %v136_v55  ;;  %v145_v10 = vadd.f32 %v144_v60, %v143_v56  ;;  %v152_v12 = vadd.f32 %v151_v61, %v150_v57 }
 0x127   :  { %v158_v14 = vrot.slane %v157_v62, 4  ;;  %v165_v15 = vrot.slane %v164_v63, 4  ;;  %v172_v16 = vrot.slane %v171_v2, 4  ;;  %v179_v18 = vrot.slane %v178_v6, 4 }
 0x128   :  { %v132_v19 = vrot.slane %v131_v7, 2  ;;  %v139_v20 = vrot.slane %v138_v9, 2  ;;  %v146_v21 = vrot.slane %v145_v10, 2  ;;  %v153_v22 = vrot.slane %v152_v12, 2 }
 0x129   :  { %v159_v23 = vadd.f32 %v158_v14, %v157_v62  ;;  %v166_v24 = vadd.f32 %v165_v15, %v164_v63  ;;  %v173_v25 = vadd.f32 %v172_v16, %v171_v2  ;;  %v180_v26 = vadd.f32 %v179_v18, %v178_v6 }
 0x12a   :  { %v133_v27 = vadd.f32 %v132_v19, %v131_v7  ;;  %v140_v28 = vadd.f32 %v139_v20, %v138_v9  ;;  %v147_v30 = vadd.f32 %v146_v21, %v145_v10  ;;  %v154_v31 = vadd.f32 %v153_v22, %v152_v12 }
 0x12b   :  { %v160_v32 = vrot.slane %v159_v23, 2  ;;  %v167_v33 = vrot.slane %v166_v24, 2  ;;  %v174_v34 = vrot.slane %v173_v25, 2  ;;  %v181_v35 = vrot.slane %v180_v26, 2 }
 0x12c   :  { %v134_v36 = vrot.slane %v133_v27, 1  ;;  %v141_v37 = vrot.slane %v140_v28, 1  ;;  %v148_v41 = vrot.slane %v147_v30, 1  ;;  %v155_v46 = vrot.slane %v154_v31, 1 }
 0x12d   :  { %v161_v47 = vadd.f32 %v160_v32, %v159_v23  ;;  %v168_v48 = vadd.f32 %v167_v33, %v166_v24  ;;  %v175_v49 = vadd.f32 %v174_v34, %v173_v25  ;;  %v182_v50 = vadd.f32 %v181_v35, %v180_v26 }
 0x12e   :  { %v135_v51 = vadd.f32 %v134_v36, %v133_v27  ;;  %v142_v52 = vadd.f32 %v141_v37, %v140_v28  ;;  %v149_v53 = vadd.f32 %v148_v41, %v147_v30  ;;  %v156_v54 = vadd.f32 %v155_v46, %v154_v31 }
 0x12f   :  { %v162_v55 = vrot.slane %v161_v47, 1  ;;  %v169_v56 = vrot.slane %v168_v48, 1  ;;  %v176_v57 = vrot.slane %v175_v49, 1  ;;  %v183_v58 = vrot.slane %v182_v50, 1 }
 0x130   :  { %v201_v59 = vadd.f32 %v135_v51, %v741_v29  ;;  %v202_v60 = vadd.f32 %v186_v38, %v142_v52  ;;  %v203_v61 = vadd.f32 %v187_v39, %v149_v53  ;;  %v204_v62 = vadd.f32 %v188_v40, %v156_v54  ;;  %v798_v39 = vld [vmem:[%s933_s4 + $0x8] sm:$0xff] }
 0x131   :  { %v163_v63 = vadd.f32 %v162_v55, %v161_v47  ;;  %v170_v2 = vadd.f32 %v169_v56, %v168_v48  ;;  %v177_v6 = vadd.f32 %v176_v57, %v175_v49  ;;  %v184_v7 = vadd.f32 %v183_v58, %v182_v50  ;;  %v29_v49 = vld [vmem:[%s931_s2] sm:$0xff]  ;;  %v30_v50 = vld [vmem:[%s931_s2 + $0x8] sm:$0xff]  ;;  %v31_v55 = vld [vmem:[%s931_s2 + $0x10] sm:$0xff] }
 0x132   :  { %574 = vtanh.f32 %v201_v59  ;;  %v450_v14 = vrot.slane %v798_v39, 2  ;;  %v451_v15 = vrot.slane %v798_v39, 3  ;;  %v452_v18 = vrot.slane %v798_v39, 4  ;;  %v32_v56 = vld [vmem:[%s931_s2 + $0x18] sm:$0xff]  ;;  %v33_v57 = vld [vmem:[%s931_s2 + $0x20] sm:$0xff] }
 0x133   :  { %576 = vtanh.f32 %v202_v60  ;;  %v205_v9 = vadd.f32 %v189_v42, %v163_v63  ;;  %v206_v10 = vadd.f32 %v190_v43, %v170_v2  ;;  %v207_v38 = vadd.f32 %v191_v44, %v177_v6  ;;  %v35_v63 = vld [vmem:[%s931_s2 + $0x30] sm:$0xff]  ;;  %v36_v2 = vld [vmem:[%s931_s2 + $0x38] sm:$0xff] }
 0x134   :  { %578 = vtanh.f32 %v203_v61  ;;  %v208_v40 = vadd.f32 %v192_v45, %v184_v7  ;;  %v449_v43 = vrot.slane %v798_v39, 1  ;;  %v453_v19 = vrot.slane %v798_v39, 5 }
 0x135   :  { %580 = vtanh.f32 %v204_v62  ;;  %v454_v23 = vrot.slane %v798_v39, 6  ;;  %v455_v24 = vrot.slane %v798_v39, 7  ;;  %v34_v62 = vld [vmem:[%s931_s2 + $0x28] sm:$0xff]  ;;  %s658_s2 = smov [#allocation4]  }
 0x136   :  { %582 = vtanh.f32 %v205_v9  ;;  %s552_s13 = sshll.u32 %s658_s2, 4  ;;  %s553_s13 = int_to_ptr.vmem [resolvable:$true] %s552_s13 }
 0x137   :  { %584 = vtanh.f32 %v206_v10 }
 0x138   :  { %v575_v42 = vpop.eup %574  ;;  %586 = vtanh.f32 %v207_v38 }
 0x139   :  { %v577_v44 = vpop.eup %576  ;;  %588 = vtanh.f32 %v208_v40  ;;  %v432_v12 = vmul.f32 %v575_v42, %v575_v42 }
 0x13a   :  { %v579_v29 = vpop.eup %578  ;;  %v225_v45 = vrot.slane %v577_v44, 7  ;;  %v433_v16 = vmul.f32 %v577_v44, %v577_v44 }
 0x13b   :  { %v581_v20 = vpop.eup %580  ;;  %v227_v21 = vrot.slane %v579_v29, 6  ;;  %v434_v22 = vmul.f32 %v579_v29, %v579_v29  ;;  %v440_v30 = vsub.f32 1.0, %v432_v12 }
 0x13c   :  { %v583_v25 = vpop.eup %582  ;;  %v226_v26 = vsel %vm81_vm0, %v225_v45, %v575_v42  ;;  %v229_v27 = vrot.slane %v581_v20, 5  ;;  %v810_v28 = vmul.f32 %v581_v20, %v581_v20  ;;  %v441_v35 = vsub.f32 1.0, %v433_v16 }
 0x13d   :  { %v585_v31 = vpop.eup %584  ;;  %v228_v32 = vsel %vm83_vm1, %v227_v21, %v226_v26  ;;  %v231_v33 = vrot.slane %v583_v25, 4  ;;  %v813_v34 = vmul.f32 %v583_v25, %v583_v25  ;;  %v442_v47 = vsub.f32 1.0, %v434_v22 }
 0x13e   :  { %v587_v36 = vpop.eup %586  ;;  %v230_v37 = vsel %vm85_vm2, %v229_v27, %v228_v32  ;;  %v234_v41 = vrot.slane %v585_v31, 3  ;;  %v816_v46 = vmul.f32 %v585_v31, %v585_v31  ;;  %v443_v54 = vsub.f32 1.0, %v810_v28 }
 0x13f   :  { %v589_v48 = vpop.eup %588  ;;  %v233_v51 = vsel %vm232_vm4, %v231_v33, %v230_v37  ;;  %v237_v52 = vrot.slane %v587_v36, 2  ;;  %v825_v53 = vmul.f32 %v587_v36, %v587_v36  ;;  %v444_v61 = vsub.f32 1.0, %v813_v34 }
 0x140   :  { %v236_v58 = vsel %vm235_vm5, %v234_v41, %v233_v51  ;;  %v240_v59 = vrot.slane %v589_v48, 1  ;;  %v838_v60 = vmul.f32 %v589_v48, %v589_v48  ;;  %v445_v7 = vsub.f32 1.0, %v816_v46 }
 0x141   :  { %v239_v6 = vsel %vm238_vm6, %v237_v52, %v236_v58  ;;  %v446_v9 = vsub.f32 1.0, %v825_v53  ;;  %v854_v10 = vmul.f32 %v440_v30, %v798_v39  ;;  %v858_v42 = vmul.f32 %v449_v43, %v441_v35 }
 0x142   :  { %v242_v38 = vsel %vm241_vm7, %v240_v59, %v239_v6  ;;  %v447_v40 = vsub.f32 1.0, %v838_v60  ;;  %v860_v44 = vmul.f32 %v450_v14, %v442_v47 }
 0x143   :  { %v244_v12 = vmul.f32 %v242_v38, %v29_v49  ;;  %v245_v29 = vmul.f32 %v242_v38, %v30_v50  ;;  %v246_v45 = vmul.f32 %v242_v38, %v31_v55  ;;  %v247_v16 = vmul.f32 %v242_v38, %v32_v56 }
 0x144   :  { %v248_v20 = vmul.f32 %v242_v38, %v33_v57  ;;  %v249_v21 = vmul.f32 %v242_v38, %v34_v62  ;;  %v250_v22 = vmul.f32 %v242_v38, %v35_v63  ;;  %v251_v25 = vmul.f32 %v242_v38, %v36_v2 }
 0x145   :  { %v252_v26 = vsel %vm128_vm3, %v244_v12, 0.0  ;;  %v259_v27 = vsel %vm128_vm3, %v245_v29, 0.0  ;;  %v266_v30 = vsel %vm128_vm3, %v246_v45, 0.0  ;;  %v273_v31 = vsel %vm128_vm3, %v247_v16, 0.0 }
 0x146   :  { %v253_v43 = vrot.slane %v252_v26, 4  ;;  %v260_v32 = vrot.slane %v259_v27, 4  ;;  %v267_v14 = vrot.slane %v266_v30, 4  ;;  %v274_v33 = vrot.slane %v273_v31, 4 }
 0x147   :  { %v280_v35 = vsel %vm128_vm3, %v248_v20, 0.0  ;;  %v287_v36 = vsel %vm128_vm3, %v249_v21, 0.0  ;;  %v294_v37 = vsel %vm128_vm3, %v250_v22, 0.0  ;;  %v301_v41 = vsel %vm128_vm3, %v251_v25, 0.0 }
 0x148   :  { %v254_v47 = vadd.f32 %v253_v43, %v252_v26  ;;  %v261_v48 = vadd.f32 %v260_v32, %v259_v27  ;;  %v268_v49 = vadd.f32 %v267_v14, %v266_v30  ;;  %v275_v50 = vadd.f32 %v274_v33, %v273_v31 }
 0x149   :  { %v281_v51 = vrot.slane %v280_v35, 4  ;;  %v288_v52 = vrot.slane %v287_v36, 4  ;;  %v295_v55 = vrot.slane %v294_v37, 4  ;;  %v302_v56 = vrot.slane %v301_v41, 4 }
 0x14a   :  { %v255_v57 = vrot.slane %v254_v47, 2  ;;  %v262_v58 = vrot.slane %v261_v48, 2  ;;  %v269_v59 = vrot.slane %v268_v49, 2  ;;  %v276_v62 = vrot.slane %v275_v50, 2 }
 0x14b   :  { %v282_v63 = vadd.f32 %v281_v51, %v280_v35  ;;  %v289_v2 = vadd.f32 %v288_v52, %v287_v36  ;;  %v296_v6 = vadd.f32 %v295_v55, %v294_v37  ;;  %v303_v38 = vadd.f32 %v302_v56, %v301_v41 }
 0x14c   :  { %v256_v12 = vadd.f32 %v255_v57, %v254_v47  ;;  %v263_v29 = vadd.f32 %v262_v58, %v261_v48  ;;  %v270_v45 = vadd.f32 %v269_v59, %v268_v49  ;;  %v277_v16 = vadd.f32 %v276_v62, %v275_v50 }
 0x14d   :  { %v283_v20 = vrot.slane %v282_v63, 2  ;;  %v290_v21 = vrot.slane %v289_v2, 2  ;;  %v297_v22 = vrot.slane %v296_v6, 2  ;;  %v304_v25 = vrot.slane %v303_v38, 2 }
 0x14e   :  { %v257_v26 = vrot.slane %v256_v12, 1  ;;  %v264_v27 = vrot.slane %v263_v29, 1  ;;  %v271_v30 = vrot.slane %v270_v45, 1  ;;  %v278_v31 = vrot.slane %v277_v16, 1 }
 0x14f   :  { %v284_v43 = vadd.f32 %v283_v20, %v282_v63  ;;  %v291_v32 = vadd.f32 %v290_v21, %v289_v2  ;;  %v298_v14 = vadd.f32 %v297_v22, %v296_v6  ;;  %v305_v33 = vadd.f32 %v304_v25, %v303_v38 }
 0x150   :  { %v258_v35 = vadd.f32 %v257_v26, %v256_v12  ;;  %v265_v36 = vadd.f32 %v264_v27, %v263_v29  ;;  %v272_v37 = vadd.f32 %v271_v30, %v270_v45  ;;  %v467_v41 = vmul.f32 %v451_v15, %v443_v54 }
 0x151   :  { %v285_v47 = vrot.slane %v284_v43, 1  ;;  %v292_v48 = vrot.slane %v291_v32, 1  ;;  %v299_v49 = vrot.slane %v298_v14, 1  ;;  %v306_v50 = vrot.slane %v305_v33, 1 }
 0x152   :  { %v316_v51 = vsel %vm81_vm0, %v265_v36, %v258_v35  ;;  %v468_v52 = vmul.f32 %v452_v18, %v444_v61  ;;  %v469_v55 = vmul.f32 %v453_v19, %v445_v7  ;;  %v470_v15 = vmul.f32 %v454_v23, %v446_v9 }
 0x153   :  { %v279_v28 = vadd.f32 %v278_v31, %v277_v16  ;;  %v286_v54 = vadd.f32 %v285_v47, %v284_v43  ;;  %v293_v56 = vadd.f32 %v292_v48, %v291_v32  ;;  %v300_v57 = vadd.f32 %v299_v49, %v298_v14 }
 0x154   :  { %v317_v58 = vsel %vm83_vm1, %v272_v37, %v316_v51  ;;  %v471_v18 = vmul.f32 %v455_v24, %v447_v40  ;;  %v472_v34 = vadd.f32 1.0, %v854_v10  ;;  %v473_v19 = vadd.f32 1.0, %v858_v42 }
 0x155   :  { %v318_v46 = vsel %vm85_vm2, %v279_v28, %v317_v58  ;;  %v474_v53 = vadd.f32 1.0, %v860_v44  ;;  %v475_v23 = vadd.f32 1.0, %v467_v41  ;;  %v476_v61 = vadd.f32 1.0, %v468_v52 }
 0x156   :  { %v307_v7 = vadd.f32 %v306_v50, %v305_v33  ;;  %v319_v9 = vsel %vm232_vm4, %v286_v54, %v318_v46  ;;  %v477_v59 = vadd.f32 1.0, %v469_v55  ;;  %v478_v62 = vadd.f32 1.0, %v470_v15 }
 0x157   :  { %v320_v60 = vsel %vm235_vm5, %v293_v56, %v319_v9  ;;  %v480_v63 = vand.u32 2147483647, %v472_v34  ;;  %v481_v39 = vand.u32 2147483647, %v473_v19  ;;  %v482_v24 = vand.u32 2147483647, %v474_v53 }
 0x158   :  { %v321_v10 = vsel %vm238_vm6, %v300_v57, %v320_v60  ;;  %v479_v40 = vadd.f32 1.0, %v471_v18  ;;  %v483_v42 = vand.u32 2147483647, %v475_v23  ;;  %v484_v6 = vand.u32 2147483647, %v476_v61 }
 0x159   :  { %v322_v2 = vsel %vm241_vm7, %v307_v7, %v321_v10  ;;  %590 = vlog2.f32 %v480_v63  ;;  %v485_v44 = vand.u32 2147483647, %v477_v59  ;;  %v358_v38 = vshrl.u32 %v75_v17, 7 }
 0x15a   :  { %592 = vlog2.f32 %v481_v39  ;;  %324 = vxpose.xlu2.b32.start.end [1/1] (short) (narrow) %v322_v2, 8  ;;  %v486_v12 = vand.u32 2147483647, %v478_v62  ;;  %v487_v29 = vand.u32 2147483647, %v479_v40 }
 0x15b   :  { %594 = vlog2.f32 %v482_v24  ;;  %572 = vset.pattern.permute.xlu1 %v358_v38  ;;  %571 = vset.pattern.permute.xlu0 %v358_v38 }
 0x15c   :  { %596 = vlog2.f32 %v483_v42 }
 0x15d   :  { %598 = vlog2.f32 %v484_v6 }
 0x15e   :  { %600 = vlog2.f32 %v485_v44 }
 0x15f   :  { %v591_v45 = vpop.eup %590  ;;  %602 = vlog2.f32 %v486_v12 }
 0x160   :  { %v593_v16 = vpop.eup %592  ;;  %604 = vlog2.f32 %v487_v29  ;;  %v489_v27 = vmul.f32 0.6931472, %v591_v45 }
 0x161   :  { %v595_v20 = vpop.eup %594  ;;  %v491_v21 = vmul.f32 0.6931472, %v593_v16 }
 0x162   :  { %v597_v22 = vpop.eup %596  ;;  %v493_v25 = vmul.f32 0.6931472, %v595_v20 }
 0x163   :  { %v599_v26 = vpop.eup %598  ;;  %v495_v30 = vmul.f32 0.6931472, %v597_v22  ;;  %v512_v17 = vrot.slane %v491_v21, 7 }
 0x164   :  { %v601_v31 = vpop.eup %600  ;;  %v497_v43 = vmul.f32 0.6931472, %v599_v26  ;;  %v514_v32 = vrot.slane %v493_v25, 6 }
 0x165   :  { %v603_v14 = vpop.eup %602  ;;  %v499_v33 = vmul.f32 0.6931472, %v601_v31  ;;  %v513_v35 = vsel %vm81_vm0, %v512_v17, %v489_v27  ;;  %v516_v36 = vrot.slane %v495_v30, 5 }
 0x166   :  { %v605_v37 = vpop.eup %604  ;;  %v501_v41 = vmul.f32 0.6931472, %v603_v14  ;;  %v515_v47 = vsel %vm83_vm1, %v514_v32, %v513_v35  ;;  %v518_v48 = vrot.slane %v497_v43, 4 }
 0x167   :  { %v503_v49 = vmul.f32 0.6931472, %v605_v37  ;;  %v517_v50 = vsel %vm85_vm2, %v516_v36, %v515_v47  ;;  %v520_v51 = vrot.slane %v499_v33, 3 }
 0x168   :  { %v519_v52 = vsel %vm232_vm4, %v518_v48, %v517_v50  ;;  %v522_v55 = vrot.slane %v501_v41, 2 }
 0x169   :  { %v521_v15 = vsel %vm235_vm5, %v520_v51, %v519_v52  ;;  %v524_v28 = vrot.slane %v503_v49, 1 }
 0x16a   :  { %v523_v54 = vsel %vm238_vm6, %v522_v55, %v521_v15 }
 0x16b   :  { %v525_v56 = vsel %vm241_vm7, %v524_v28, %v523_v54 }
 0x16c   :  { %v527_v57 = vsel %vm128_vm3, %v525_v56, 0.0 }
 0x16d   :  { %v528_v58 = vrot.slane %v527_v57, 4 }
 0x16f   :  { %v529_v18 = vadd.f32 %v528_v58, %v527_v57 }
 0x171   :  { %v530_v34 = vrot.slane %v529_v18, 2 }
 0x173   :  { %v531_v19 = vadd.f32 %v530_v34, %v529_v18 }
 0x175   :  { %v532_v46 = vrot.slane %v531_v19, 1 }
 0x177   :  { %v533_v53 = vadd.f32 %v532_v46, %v531_v19 }
 0x179   :  { %535 = vst.msk [vmem:[#allocation4] sm:$0x1] %vm534_vm8, %v533_v53 }
 0x17a   :  { %557 = dma.vmem_to_hbm [thread:$0]  %s553_s13, 16, %s555_s16, [#allocation5]  }
 0x1bc   :  { %573 = vset.pattern.permute.xlu2 %v358_v38 }
 0x1f3   :  { %v340_v23 = vpop.trf.xlu2 }
 0x1f4   :  { %v370_v61 = vperm.slane %v340_v23, 2  ;;  %v363_v7 = vperm.slane %v340_v23, 1  ;;  %v356_v9 = vperm.slane %v340_v23, 0  ;;  %v377_v59 = vperm.slane %v340_v23, 3 }
 0x1f6   :  { %375 = vperm.xlu1 %572, %v370_v61   ;;  %368 = vperm.xlu0 %571, %v363_v7  }
 0x1f7   :  { %361 = vperm.xlu2 %573, %v356_v9  }
 0x1fe   :  { %382 = vperm.xlu1 %572, %v377_v59  }
 0x251   :  { %v362_v62 = vpop.permute.xlu2 %361 }
 0x252   :  { %v384_v60 = vmul.f32 %v362_v62, %v703_v1 }
 0x254   :  { %v388_v63 = vrot.slane %v384_v60, 4 }
 0x256   :  { %v389_v10 = vadd.f32 %v388_v63, %v384_v60 }
 0x258   :  { %v390_v44 = vrot.slane %v389_v10, 2 }
 0x25a   :  { %v391_v20 = vadd.f32 %v390_v44, %v389_v10 }
 0x25c   :  { %v392_v30 = vrot.slane %v391_v20, 1 }
 0x25e   :  { %v393_v32 = vadd.f32 %v392_v30, %v391_v20 }
 0x268   :  { %v376_v39 = vpop.permute.xlu1 %375  ;;  %v369_v24 = vpop.permute.xlu0 %368 }
 0x269   :  { %v386_v40 = vmul.f32 %v376_v39, %v711_v5  ;;  %v385_v42 = vmul.f32 %v369_v24, %v723_v11 }
 0x26b   :  { %v400_v2 = vrot.slane %v386_v40, 4  ;;  %v394_v6 = vrot.slane %v385_v42, 4 }
 0x26d   :  { %v401_v38 = vadd.f32 %v400_v2, %v386_v40  ;;  %v395_v12 = vadd.f32 %v394_v6, %v385_v42 }
 0x26f   :  { %v402_v29 = vrot.slane %v401_v38, 2  ;;  %v396_v45 = vrot.slane %v395_v12, 2 }
 0x270   :  { %v383_v16 = vpop.permute.xlu1 %382 }
 0x271   :  { %v403_v21 = vadd.f32 %v402_v29, %v401_v38  ;;  %v397_v22 = vadd.f32 %v396_v45, %v395_v12  ;;  %v387_v1 = vmul.f32 %v383_v16, %v730_v13  ;;  %v416_v13 = vadd.f32 %v393_v32, %v698_v0 }
 0x273   :  { %v404_v25 = vrot.slane %v403_v21, 1  ;;  %v398_v26 = vrot.slane %v397_v22, 1  ;;  %v406_v27 = vrot.slane %v387_v1, 4 }
 0x275   :  { %v399_v5 = vadd.f32 %v398_v26, %v397_v22  ;;  %v407_v17 = vadd.f32 %v406_v27, %v387_v1  ;;  %v405_v11 = vadd.f32 %v404_v25, %v403_v21 }
 0x277   :  { %v417_v31 = vadd.f32 %v399_v5, %v48_v4  ;;  %v408_v43 = vrot.slane %v407_v17, 2  ;;  %v418_v33 = vadd.f32 %v405_v11, %v49_v3 }
 0x279   :  { %v409_v14 = vadd.f32 %v408_v43, %v407_v17  ;;  %v424_v35 = vrot.slane %v417_v31, 7  ;;  %v426_v41 = vrot.slane %v418_v33, 6 }
 0x27b   :  { %v410_v36 = vrot.slane %v409_v14, 1  ;;  %v425_v48 = vsel %vm81_vm0, %v424_v35, %v416_v13 }
 0x27c   :  { %v427_v3 = vsel %vm83_vm1, %v426_v41, %v425_v48 }
 0x27d   :  { %v411_v37 = vadd.f32 %v410_v36, %v409_v14 }
 0x27f   :  { %v419_v47 = vadd.f32 %v411_v37, %v50_v8 }
 0x281   :  { %v428_v4 = vrot.slane %v419_v47, 5 }
 0x283   :  { %v429_v49 = vsel %vm85_vm2, %v428_v4, %v427_v3 }
 0x284   :  { %431 = vst [vmem:[#allocation2] sm:$0xf] %v429_v49 }
 0x285   :  { %546 = dma.vmem_to_hbm [thread:$0]  %s542_s17, 64, %s544_s20, [#allocation3]  }
 0x286   :  { %654 = dma.done.wait [#allocation3], 64  }
 0x287   :  { %655 = vsyncadd [#allocation3], 4294967232 }
 0x288   :  { %656 = dma.done.wait [#allocation5], 16  }
 0x289   :  { %657 = vsyncadd [#allocation5], 4294967280 }
 0x28a   :  { %566 = vsyncpa [#allocation3], 1 }
 0x28b   :  { %567 = vsyncpa [#allocation5], 1 }

</bundles_post_ra>
